<compile_context>
chip_gen: v5e
topology: v5e:2x2
jax: 0.10.0
libtpu: 0.0.40
codegen_flags: <defaults>
</compile_context>

<pallas_src>
import functools

import jax
import jax.numpy as jnp
from jax.experimental import pallas as pl
from jax.experimental.pallas import tpu as pltpu

EPS_FUSION = 1e-4   # fast-fusion epsilon (EfficientDet convention)
EPS_BN = 1e-5       # nn.BatchNorm2d default eps

SMEM_SPEC = pl.BlockSpec(memory_space=pltpu.MemorySpace.SMEM)


@functools.lru_cache(maxsize=None)
def _vmem_limit_bytes():
    """Per-generation scoped-VMEM budget: 75% of physical VMEM, conservative fallback."""
    cap = None
    try:
        cap = getattr(pltpu.get_tpu_info(), "vmem_capacity_bytes", None)
    except Exception:
        cap = None
    if not cap:
        cap = 64 * 1024 * 1024          # v7x per-TC physical VMEM (smallest generation)
    return int(cap) * 3 // 4


def _cparams(num_grid_axes):
    return pltpu.CompilerParams(
        dimension_semantics=("parallel",) * num_grid_axes,
        vmem_limit_bytes=_vmem_limit_bytes())


def _matmul_last_dim(x, w):
    """x[..., Cin] @ w[Cin, Cout].

    Small channel counts would leave the MXU ~1-6% utilised, so the contraction is a
    VPU multiply-accumulate; C>=64 uses the MXU.  precision=HIGHEST keeps f32 parity
    with the PyTorch float32 reference (swap to bf16 inputs for production on v6e/v7x)."""
    cin, cout = w.shape
    if cin >= 64 and cout >= 64:
        y = jnp.dot(x.reshape(-1, cin), w,
                    preferred_element_type=jnp.float32,
                    precision=jax.lax.Precision.HIGHEST)
        return y.reshape(x.shape[:-1] + (cout,))
    acc = x[..., 0:1] * w[0:1, :]
    for k in range(1, cin):
        acc = acc + x[..., k:k + 1] * w[k:k + 1, :]
    return acc


def _shift_w(x, delta, fill):
    """result[..., w, :] = x[..., w+delta, :] (delta in {-1,+1}), out-of-range -> fill.

    The shift is a sublane (axis=2) rotation on the XLU plus one edge select, instead
    of a sublane-misaligned reload / concatenated copy."""
    Wd = x.shape[2]
    wi = jax.lax.broadcasted_iota(jnp.int32, x.shape, 2)
    if delta == -1:
        rolled = pltpu.roll(x, shift=1, axis=2)          # rolled[w] = x[w-1]
        return jnp.where(wi == 0, fill, rolled)
    else:
        rolled = pltpu.roll(x, shift=Wd - 1, axis=2)     # rolled[w] = x[w+1]
        return jnp.where(wi == Wd - 1, fill, rolled)


def _maxpool_3x3_s2(x_ref):
    """nn.MaxPool2d(3, 2, 1) computed phase-wise at the stride-2 output positions.

    Four strided reads of the VMEM block give the even/odd row/column phases; the
    'column - 1' neighbours come from one sublane roll per row parity and the
    'row - 1' neighbours from a single small concat along the (untiled) H axis.
    No scratch buffer, no dense intermediate, no HBM round trip."""
    _, Hi, Wi, C = x_ref.shape
    Ho, Wo = Hi // 2, Wi // 2
    dt = x_ref.dtype
    ninf = jnp.asarray(-jnp.inf, dt)

    p00 = x_ref[:, pl.ds(0, Ho, 2), pl.ds(0, Wo, 2), :]   # x[2oh,   2ow]
    p01 = x_ref[:, pl.ds(0, Ho, 2), pl.ds(1, Wo, 2), :]   # x[2oh,   2ow+1]
    p10 = x_ref[:, pl.ds(1, Ho, 2), pl.ds(0, Wo, 2), :]   # x[2oh+1, 2ow]
    p11 = x_ref[:, pl.ds(1, Ho, 2), pl.ds(1, Wo, 2), :]   # x[2oh+1, 2ow+1]

    # column-direction max over {2ow-1, 2ow, 2ow+1} for the even / odd rows
    even = jnp.maximum(jnp.maximum(p00, p01), _shift_w(p01, -1, ninf))
    odd = jnp.maximum(jnp.maximum(p10, p11), _shift_w(p11, -1, ninf))

    # row-direction: out[oh] = max(even[oh], odd[oh], odd[oh-1]);  odd[-1] = -inf pad
    pad_row = jnp.full((1, 1, Wo, C), -jnp.inf, dt)
    if Ho > 1:
        odd_up = jnp.concatenate([pad_row, odd[:, :Ho - 1]], axis=1)
    else:
        odd_up = pad_row
    return jnp.maximum(jnp.maximum(even, odd), odd_up)


# ----------------------------- 1x1 convolution -----------------------------

def _conv1x1_kernel(x_ref, w_ref, b_ref, o_ref):
    y = _matmul_last_dim(x_ref[...], w_ref[...]) + b_ref[...]
    o_ref[...] = y.astype(o_ref.dtype)


def conv1x1(x, w, b, row_tile=8192):
    """Static_ConvLayer(cin, cout, 1, bias=True, Act=None) as a row-tiled Pallas kernel.

    Row tile target raised to 8192 rows and pl.cdiv-gridded (Pallas masks the tail
    block), so awkward row counts neither blow VMEM nor fall back to tiny tiles."""
    N, H, W, Cin = x.shape
    Cout = w.shape[1]
    rows = N * H * W
    tile = rows if rows <= row_tile else row_tile        # tile is a multiple of 8 or == rows
    out = pl.pallas_call(
        _conv1x1_kernel,
        grid=(pl.cdiv(rows, tile),),
        in_specs=[pl.BlockSpec((tile, Cin), lambda i: (i, 0)),
                  pl.BlockSpec((Cin, Cout), lambda i: (0, 0)),
                  pl.BlockSpec((1, Cout), lambda i: (0, 0))],
        out_specs=pl.BlockSpec((tile, Cout), lambda i: (i, 0)),
        out_shape=jax.ShapeDtypeStruct((rows, Cout), x.dtype),
        compiler_params=_cparams(1),
    )(x.reshape(rows, Cin), w, b.reshape(1, Cout))
    return out.reshape(N, H, W, Cout)


# ------------------------ fused BiFPN node kernel ------------------------

def _make_fuse_kernel(num, H, W, C, pool_first, upsample_second):
    """Fusion('fast') + SiLU + Seperable_Conv2d(3x3 dw + 1x1 pw, bias) + BatchNorm2d
    (BN pre-folded into the pointwise weights).

    pool_first       : first input is 2x finer and max-pooled (3x3, s2, p1) in-kernel.
    upsample_second  : second input is 2x coarser and nearest-upsampled in-kernel."""

    def kernel(*refs):
        fw_ref = refs[0]                               # (num,) normalized fusion weights, SMEM
        x_refs = refs[1:1 + num]                       # feature blocks
        dw_ref, pw_ref, pb_ref, o_ref = refs[1 + num:5 + num]
        up_scr = refs[5 + num] if upsample_second else None   # (1, H/2, W, C)

        xs = []
        for i in range(num):
            if i == 0 and pool_first:
                xs.append(_maxpool_3x3_s2(x_refs[0]))
            elif i == 1 and upsample_second:
                # nearest 2x upsample in VMEM: W-doubling via two sublane-strided
                # stores, H-doubling via a leading-dim broadcast + trivial reshape.
                Hc, Wc = H // 2, W // 2
                x1v = x_refs[1][...]                   # (1, Hc, Wc, C)
                up_scr[:, :, pl.ds(0, Wc, 2), :] = x1v
                up_scr[:, :, pl.ds(1, Wc, 2), :] = x1v
                uw = up_scr[...]                       # (1, Hc, W, C)
                xs.append(jnp.broadcast_to(uw[:, :, None, :, :],
                                           (1, Hc, 2, W, C)).reshape(1, H, W, C))
            else:
                xs.append(x_refs[i][...])

        # ---- fast feature fusion (weights relu-normalized on the host) ----
        fused = fw_ref[0] * xs[0]
        for i in range(1, num):
            fused = fused + fw_ref[i] * xs[i]

        # ---- SiLU ----
        act = fused * jax.nn.sigmoid(fused)

        # ---- depthwise 3x3 conv, stride 1, zero padding 1 (no padded scratch) ----
        # Three H-bands (act[h-1], act[h], act[h+1]) are tap-weighted per column
        # offset first, then the two +/-1 column shifts run on the XLU via roll.
        taps = dw_ref[...]                             # (9, C) per-channel taps
        zero = jnp.zeros((), act.dtype)
        zrow = jnp.zeros((1, 1, W, C), act.dtype)
        band_up = jnp.concatenate([zrow, act[:, :H - 1]], axis=1)   # act[h-1]
        band_dn = jnp.concatenate([act[:, 1:], zrow], axis=1)       # act[h+1]
        col = []
        for kw in range(3):
            col.append(taps[kw:kw + 1, :] * band_up
                       + taps[3 + kw:4 + kw, :] * act
                       + taps[6 + kw:7 + kw, :] * band_dn)
        dw_out = _shift_w(col[0], -1, zero) + col[1] + _shift_w(col[2], +1, zero)

        # ---- pointwise 1x1 conv + bias (BatchNorm folded into pw/pb on host) ----
        y = _matmul_last_dim(dw_out, pw_ref[...]) + pb_ref[...]
        o_ref[...] = y.astype(o_ref.dtype)

    return kernel


def fuse_block(params, xs, pool_first=False, upsample_second=False):
    """One BiFPN fuse node.  Grid over batch; each image is one pipelined block."""
    num = len(xs)
    if pool_first:
        N, H, W, C = xs[1].shape
        assert xs[0].shape == (N, 2 * H, 2 * W, C), "pool_first expects a 2x finer first input"
    else:
        N, H, W, C = xs[0].shape
    if upsample_second:
        assert num >= 2 and xs[1].shape == (N, H // 2, W // 2, C), \
            "upsample_second expects a 2x coarser second input"

    # Fold BatchNorm2d (inference, running stats) into the pointwise conv.
    bn = params['bn']                                   # (4, C): gamma, beta, mean, var
    scale = bn[0] * jax.lax.rsqrt(bn[3] + EPS_BN)
    pw_eff = params['pw'] * scale[None, :]
    pb_eff = (params['pb'] - bn[2][None, :]) * scale[None, :] + bn[1][None, :]

    # Fast fusion weights: relu(w_i) / (sum relu(w) + eps)  (num scalars -> host math).
    w = jnp.maximum(params['fw'], 0.0)
    fw = (w / (jnp.sum(w) + EPS_FUSION)).astype(jnp.float32)

    def spec_for(idx):
        if idx == 0 and pool_first:
            return pl.BlockSpec((1, 2 * H, 2 * W, C), lambda n: (n, 0, 0, 0))
        if idx == 1 and upsample_second:
            return pl.BlockSpec((1, H // 2, W // 2, C), lambda n: (n, 0, 0, 0))
        return pl.BlockSpec((1, H, W, C), lambda n: (n, 0, 0, 0))

    in_specs = ([SMEM_SPEC]
                + [spec_for(i) for i in range(num)]
                + [pl.BlockSpec((9, C), lambda n: (0, 0)),      # depthwise taps
                   pl.BlockSpec((C, C), lambda n: (0, 0)),      # pointwise (BN folded)
                   pl.BlockSpec((1, C), lambda n: (0, 0))])     # bias (BN folded)

    scratch = ([pltpu.VMEM((1, H // 2, W, C), xs[1].dtype)] if upsample_second else [])

    return pl.pallas_call(
        _make_fuse_kernel(num, H, W, C, pool_first, upsample_second),
        grid=(N,),
        in_specs=in_specs,
        out_specs=pl.BlockSpec((1, H, W, C), lambda n: (n, 0, 0, 0)),
        out_shape=jax.ShapeDtypeStruct((N, H, W, C), xs[0].dtype),
        scratch_shapes=scratch,
        compiler_params=_cparams(1),
    )(fw, *xs, params['dw'], pw_eff, pb_eff)


# ----------------------------- parameter init -----------------------------

def init_conv1x1(key, cin, cout):
    kw, kb = jax.random.split(key)
    return {'w': jax.random.normal(kw, (cin, cout), jnp.float32) * 0.1,
            'b': jax.random.normal(kb, (cout,), jnp.float32) * 0.1}


def init_fuse(key, num, c):
    k1, k2, k3 = jax.random.split(key, 3)
    # BatchNorm fresh init: gamma=1, beta=0, running_mean=0, running_var=1 (eval mode)
    bn = jnp.stack([jnp.ones((c,), jnp.float32), jnp.zeros((c,), jnp.float32),
                    jnp.zeros((c,), jnp.float32), jnp.ones((c,), jnp.float32)])
    return {'fw': jnp.ones((num,), jnp.float32),                         # Fusion weights init to 1
            'dw': jax.random.normal(k1, (9, c), jnp.float32) * 0.1,      # depthwise 3x3 taps
            'pw': jax.random.normal(k2, (c, c), jnp.float32) * 0.1,      # pointwise 1x1
            'pb': (jax.random.normal(k3, (c,), jnp.float32) * 0.1).reshape(1, c),
            'bn': bn}


def init_bifpn_layer(key, num_levels, in_channels, out_channels):
    first = list(in_channels) != num_levels * [out_channels]
    keys = jax.random.split(key, 64)
    it = iter(range(64))
    p = {'first': first}
    if first:
        # TODO(synk): Resample_FPN extra-level path (num_in < num_levels, conv + maxpool) not exercised here.
        assert len(in_channels) == num_levels
        p['resample'] = [init_conv1x1(keys[next(it)], c, out_channels) for c in in_channels]
        p['branches'] = [init_conv1x1(keys[next(it)], c, out_channels) for c in in_channels[1:]]
    p['td_fuses'] = [init_fuse(keys[next(it)], 2, out_channels) for _ in range(num_levels - 1)]
    bu = [init_fuse(keys[next(it)], 3, out_channels) for _ in range(num_levels - 2)]
    bu.append(init_fuse(keys[next(it)], 2, out_channels))
    p['bu_fuses'] = bu
    return p


# ----------------------------- forward passes -----------------------------

def bifpn_layer_forward(p, features, num_levels):
    features = list(features)
    if not p['first']:
        branches = list(features[1:-1])
    else:
        branches = [conv1x1(features[i + 1], b['w'], b['b'])
                    for i, b in enumerate(p['branches'])]
        features = [conv1x1(f, c['w'], c['b']) for f, c in zip(features, p['resample'])]
        branches = branches + features[len(branches) + 1:-1]

    # top-down path: the nearest 2x upsample of the coarser level is fused into the kernel
    td_features = []
    for i in range(num_levels - 1, -1, -1):
        if i == len(features) - 1:
            td_features.append(features[i])
        else:
            td_features.append(fuse_block(p['td_fuses'][i],
                                          [features[i], td_features[-1]],
                                          upsample_second=True))
    td_features = td_features[::-1]

    # bottom-up path: the 3x3/s2 maxpool of the previous level is fused into the kernel
    bu_features = []
    for i in range(num_levels):
        if i == 0:
            bu_features.append(td_features[i])
        elif i != num_levels - 1:
            bu_features.append(fuse_block(p['bu_fuses'][i - 1],
                                          [bu_features[-1], td_features[i], branches[i - 1]],
                                          pool_first=True))
        else:
            bu_features.append(fuse_block(p['bu_fuses'][i - 1],
                                          [bu_features[-1], td_features[i]],
                                          pool_first=True))
    return bu_features


def bifpn_forward(params, features, num_levels):
    for p in params['layers']:
        features = bifpn_layer_forward(p, features, num_levels)
    return features


# ----------------------------- demo -----------------------------

if __name__ == "__main__":
    num_levels, num_repeat = 3, 2
    in_channels = [4, 8, 16]
    out_channels = 8
    N = 2
    sizes = [(16, 16), (8, 8), (4, 4)]     # bottom-to-top, each level half the previous

    key = jax.random.PRNGKey(0)
    kf, kp = jax.random.split(key)
    fkeys = jax.random.split(kf, num_levels)
    features = [jax.random.normal(fkeys[i], (N, sizes[i][0], sizes[i][1], in_channels[i]),
                                  jnp.float32) for i in range(num_levels)]

    lkeys = jax.random.split(kp, num_repeat)
    layers = [init_bifpn_layer(lkeys[0], num_levels, in_channels, out_channels)]
    for r in range(1, num_repeat):
        layers.append(init_bifpn_layer(lkeys[r], num_levels,
                                       num_levels * [out_channels], out_channels))
    params = {'layers': layers}

    outs = bifpn_forward(params, features, num_levels)
    for o in outs:
        jax.block_until_ready(o)

    expected = [(N, s[0], s[1], out_channels) for s in sizes]
    assert [tuple(o.shape) for o in outs] == expected, "unexpected output shapes"
    assert all(bool(jnp.all(jnp.isfinite(o))) for o in outs), "non-finite outputs"
    print("KERNEL_OK")
</pallas_src>

<mosaic_0001>
module attributes {stable_mosaic.version = 11 : i64} {
  func.func @_conv1x1_kernel(%arg0: i32, %arg1: memref<128x8xf32, #tpu.memory_space<vmem>>, %arg2: memref<8x8xf32, #tpu.memory_space<vmem>>, %arg3: memref<1x8xf32, #tpu.memory_space<vmem>>, %arg4: memref<128x8xf32, #tpu.memory_space<vmem>>) attributes {dimension_semantics = [#tpu.dimension_semantics<parallel>], iteration_bounds = array<i64: 1>, scalar_prefetch = 0 : i64, scratch_operands = 0 : i64, tpu.core_type = #tpu.core_type<tc>, window_params = [{transform_indices = @transform_0, window_bounds = array<i64: 128, 8>}, {pipeline_mode = #tpu.pipeline_mode<synchronous>, transform_indices = @transform_1, window_bounds = array<i64: 8, 8>}, {pipeline_mode = #tpu.pipeline_mode<synchronous>, transform_indices = @transform_2, window_bounds = array<i64: 1, 8>}, {transform_indices = @transform_3, window_bounds = array<i64: 128, 8>}]} {
    %c0 = arith.constant 0 : index
    %c0_0 = arith.constant 0 : index
    %0 = vector.load %arg1[%c0, %c0_0] : memref<128x8xf32, #tpu.memory_space<vmem>>, vector<128x8xf32>
    %c0_1 = arith.constant 0 : index
    %c0_2 = arith.constant 0 : index
    %1 = vector.load %arg2[%c0_1, %c0_2] : memref<8x8xf32, #tpu.memory_space<vmem>>, vector<8x8xf32>
    %2 = vector.extract_strided_slice %0 {offsets = [0, 0], sizes = [128, 1], strides = [1, 1]} : vector<128x8xf32> to vector<128x1xf32>
    %3 = vector.extract_strided_slice %1 {offsets = [0, 0], sizes = [1, 8], strides = [1, 1]} : vector<8x8xf32> to vector<1x8xf32>
    %4 = vector.broadcast %2 : vector<128x1xf32> to vector<128x8xf32>
    %5 = vector.broadcast %3 : vector<1x8xf32> to vector<128x8xf32>
    %6 = arith.mulf %4, %5 : vector<128x8xf32>
    %7 = vector.extract_strided_slice %0 {offsets = [0, 1], sizes = [128, 1], strides = [1, 1]} : vector<128x8xf32> to vector<128x1xf32>
    %8 = vector.extract_strided_slice %1 {offsets = [1, 0], sizes = [1, 8], strides = [1, 1]} : vector<8x8xf32> to vector<1x8xf32>
    %9 = vector.broadcast %7 : vector<128x1xf32> to vector<128x8xf32>
    %10 = vector.broadcast %8 : vector<1x8xf32> to vector<128x8xf32>
    %11 = arith.mulf %9, %10 : vector<128x8xf32>
    %12 = arith.addf %6, %11 : vector<128x8xf32>
    %13 = vector.extract_strided_slice %0 {offsets = [0, 2], sizes = [128, 1], strides = [1, 1]} : vector<128x8xf32> to vector<128x1xf32>
    %14 = vector.extract_strided_slice %1 {offsets = [2, 0], sizes = [1, 8], strides = [1, 1]} : vector<8x8xf32> to vector<1x8xf32>
    %15 = vector.broadcast %13 : vector<128x1xf32> to vector<128x8xf32>
    %16 = vector.broadcast %14 : vector<1x8xf32> to vector<128x8xf32>
    %17 = arith.mulf %15, %16 : vector<128x8xf32>
    %18 = arith.addf %12, %17 : vector<128x8xf32>
    %19 = vector.extract_strided_slice %0 {offsets = [0, 3], sizes = [128, 1], strides = [1, 1]} : vector<128x8xf32> to vector<128x1xf32>
    %20 = vector.extract_strided_slice %1 {offsets = [3, 0], sizes = [1, 8], strides = [1, 1]} : vector<8x8xf32> to vector<1x8xf32>
    %21 = vector.broadcast %19 : vector<128x1xf32> to vector<128x8xf32>
    %22 = vector.broadcast %20 : vector<1x8xf32> to vector<128x8xf32>
    %23 = arith.mulf %21, %22 : vector<128x8xf32>
    %24 = arith.addf %18, %23 : vector<128x8xf32>
    %25 = vector.extract_strided_slice %0 {offsets = [0, 4], sizes = [128, 1], strides = [1, 1]} : vector<128x8xf32> to vector<128x1xf32>
    %26 = vector.extract_strided_slice %1 {offsets = [4, 0], sizes = [1, 8], strides = [1, 1]} : vector<8x8xf32> to vector<1x8xf32>
    %27 = vector.broadcast %25 : vector<128x1xf32> to vector<128x8xf32>
    %28 = vector.broadcast %26 : vector<1x8xf32> to vector<128x8xf32>
    %29 = arith.mulf %27, %28 : vector<128x8xf32>
    %30 = arith.addf %24, %29 : vector<128x8xf32>
    %31 = vector.extract_strided_slice %0 {offsets = [0, 5], sizes = [128, 1], strides = [1, 1]} : vector<128x8xf32> to vector<128x1xf32>
    %32 = vector.extract_strided_slice %1 {offsets = [5, 0], sizes = [1, 8], strides = [1, 1]} : vector<8x8xf32> to vector<1x8xf32>
    %33 = vector.broadcast %31 : vector<128x1xf32> to vector<128x8xf32>
    %34 = vector.broadcast %32 : vector<1x8xf32> to vector<128x8xf32>
    %35 = arith.mulf %33, %34 : vector<128x8xf32>
    %36 = arith.addf %30, %35 : vector<128x8xf32>
    %37 = vector.extract_strided_slice %0 {offsets = [0, 6], sizes = [128, 1], strides = [1, 1]} : vector<128x8xf32> to vector<128x1xf32>
    %38 = vector.extract_strided_slice %1 {offsets = [6, 0], sizes = [1, 8], strides = [1, 1]} : vector<8x8xf32> to vector<1x8xf32>
    %39 = vector.broadcast %37 : vector<128x1xf32> to vector<128x8xf32>
    %40 = vector.broadcast %38 : vector<1x8xf32> to vector<128x8xf32>
    %41 = arith.mulf %39, %40 : vector<128x8xf32>
    %42 = arith.addf %36, %41 : vector<128x8xf32>
    %43 = vector.extract_strided_slice %0 {offsets = [0, 7], sizes = [128, 1], strides = [1, 1]} : vector<128x8xf32> to vector<128x1xf32>
    %44 = vector.extract_strided_slice %1 {offsets = [7, 0], sizes = [1, 8], strides = [1, 1]} : vector<8x8xf32> to vector<1x8xf32>
    %45 = vector.broadcast %43 : vector<128x1xf32> to vector<128x8xf32>
    %46 = vector.broadcast %44 : vector<1x8xf32> to vector<128x8xf32>
    %47 = arith.mulf %45, %46 : vector<128x8xf32>
    %48 = arith.addf %42, %47 : vector<128x8xf32>
    %c0_3 = arith.constant 0 : index
    %c0_4 = arith.constant 0 : index
    %49 = vector.load %arg3[%c0_3, %c0_4] : memref<1x8xf32, #tpu.memory_space<vmem>>, vector<1x8xf32>
    %50 = vector.broadcast %49 : vector<1x8xf32> to vector<128x8xf32>
    %51 = arith.addf %48, %50 : vector<128x8xf32>
    %c0_5 = arith.constant 0 : index
    %c0_6 = arith.constant 0 : index
    %52 = vector.load %arg4[%c0_5, %c0_6] : memref<128x8xf32, #tpu.memory_space<vmem>>, vector<128x8xf32>
    tpu.vector_store %arg4[%c0_5, %c0_6], %51 {strides = array<i32>} : memref<128x8xf32, #tpu.memory_space<vmem>>, vector<128x8xf32>,
    return
  }
  func.func @transform_0(%arg0: i32) -> (i32, i32) {
    %c0_i32 = arith.constant 0 : i32
    %c0_i32_0 = arith.constant 0 : i32
    return %arg0, %c0_i32 : i32, i32
  }
  func.func @transform_1(%arg0: i32) -> (i32, i32) {
    %c0_i32 = arith.constant 0 : i32
    %c0_i32_0 = arith.constant 0 : i32
    %c0_i32_1 = arith.constant 0 : i32
    return %c0_i32, %c0_i32_0 : i32, i32
  }
  func.func @transform_2(%arg0: i32) -> (i32, i32) {
    %c0_i32 = arith.constant 0 : i32
    %c0_i32_0 = arith.constant 0 : i32
    %c0_i32_1 = arith.constant 0 : i32
    return %c0_i32, %c0_i32_0 : i32, i32
  }
  func.func @transform_3(%arg0: i32) -> (i32, i32) {
    %c0_i32 = arith.constant 0 : i32
    %c0_i32_0 = arith.constant 0 : i32
    return %arg0, %c0_i32 : i32, i32
  }
}

</mosaic_0001>

<bundles_post_ra>
// kernel: tpu_custom_call.1
= control target key start
LH: loop header
LB: loop body
LE: loop exit
PB: predicated region body
PF: predicated region fallthrough
CT: control target
= control target key end

     0   :  { %v881_v0 = vmov 0   ;;  %v882_v17 = vmov 1   ;;  %v883_v18 = vmov 2   ;;  %v884_v28 = vmov 3   ;;  %s1533_s0 = inlined_call_operand.vmem [shape: f32[128,8], index: 0, kind: input, shape index: {}]   ;;  %s1534_s1 = inlined_call_operand.vmem [shape: f32[8,8], index: 1, kind: input, shape index: {}]   ;;  %s1535_s2 = inlined_call_operand.vmem [shape: f32[1,8], index: 2, kind: input, shape index: {}]   ;;  %s1536_s3 = inlined_call_operand.vmem [shape: f32[128,8], index: 3, kind: output, shape index: {}]  }
   0x1   :  { %858 = vset.pattern.permute.xlu2 %v881_v0  ;;  %857 = vset.pattern.permute.xlu1 %v881_v0  ;;  %v912_v1 = vld [vmem:[%s1533_s0 + $0x20] sm:$0xff]  ;;  %v917_v2 = vld [vmem:[%s1533_s0 + $0x10] sm:$0xff]  ;;  %v930_v4 = vld [vmem:[%s1533_s0 + $0x28] sm:$0xff]  ;;  %vm827_vm0 = vcmask 64512  }
   0x2   :  { %v922_v3 = vld [vmem:[%s1533_s0] sm:$0xff]  ;;  %856 = vset.pattern.permute.xlu0 %v881_v0  ;;  %53 = vperm.xlu2 %858, %v912_v1   ;;  %v935_v5 = vld [vmem:[%s1533_s0 + $0x18] sm:$0xff]  ;;  %v940_v6 = vld [vmem:[%s1533_s0 + $0x8] sm:$0xff] }
   0x3   :  { %43 = vperm.xlu1 %857, %v917_v2   ;;  %33 = vperm.xlu0 %856, %v922_v3   ;;  %v948_v7 = vld [vmem:[%s1533_s0 + $0x40] sm:$0xff]  ;;  %v953_v8 = vld [vmem:[%s1533_s0 + $0x38] sm:$0xff]  ;;  %v958_v9 = vld [vmem:[%s1533_s0 + $0x30] sm:$0xff] }
   0x4   :  { %v966_v10 = vld [vmem:[%s1533_s0 + $0x58] sm:$0xff]  ;;  %v971_v11 = vld [vmem:[%s1533_s0 + $0x50] sm:$0xff]  ;;  %v976_v12 = vld [vmem:[%s1533_s0 + $0x48] sm:$0xff] }
   0x5   :  { %v984_v13 = vld [vmem:[%s1533_s0 + $0x70] sm:$0xff]  ;;  %v989_v14 = vld [vmem:[%s1533_s0 + $0x68] sm:$0xff]  ;;  %v994_v15 = vld [vmem:[%s1533_s0 + $0x60] sm:$0xff] }
   0x6   :  { %v1002_v16 = vld [vmem:[%s1533_s0 + $0x78] sm:$0xff]  ;;  %v1050_v29 = vld [vmem:[%s1534_s1] sm:$0xff] }
   0x7   :  { %v1053_v30 = vperm.slane %v1050_v29, 0  ;;  %v1060_v33 = vperm.slane %v1050_v29, 1 }
   0xa   :  { %58 = vperm.xlu2 %858, %v930_v4  }
   0xb   :  { %48 = vperm.xlu1 %857, %v935_v5   ;;  %38 = vperm.xlu0 %856, %v940_v6  }
  0x12   :  { %73 = vperm.xlu2 %858, %v948_v7  }
  0x13   :  { %68 = vperm.xlu1 %857, %v953_v8   ;;  %63 = vperm.xlu0 %856, %v958_v9  }
  0x1a   :  { %88 = vperm.xlu2 %858, %v966_v10  }
  0x1b   :  { %83 = vperm.xlu1 %857, %v971_v11   ;;  %78 = vperm.xlu0 %856, %v976_v12  }
  0x22   :  { %103 = vperm.xlu2 %858, %v984_v13  }
  0x23   :  { %98 = vperm.xlu1 %857, %v989_v14   ;;  %93 = vperm.xlu0 %856, %v994_v15  }
  0x2a   :  { %860 = vset.pattern.permute.xlu2 %v882_v17 }
  0x2b   :  { %859 = vset.pattern.permute.xlu1 %v882_v17  ;;  %108 = vperm.xlu0 %856, %v1002_v16  }
  0x2c   :  { %133 = vperm.xlu2 %860, %v940_v6   ;;  %129 = vperm.xlu1 %859, %v922_v3  }
  0x33   :  { %861 = vset.pattern.permute.xlu0 %v882_v17  ;;  %v885_v17 = vmov 4  }
  0x34   :  { %145 = vperm.xlu2 %860, %v912_v1   ;;  %141 = vperm.xlu1 %859, %v935_v5  }
  0x35   :  { %137 = vperm.xlu0 %861, %v917_v2  }
  0x3c   :  { %153 = vperm.xlu2 %860, %v958_v9   ;;  %149 = vperm.xlu1 %859, %v930_v4  }
  0x3d   :  { %157 = vperm.xlu0 %861, %v953_v8  }
  0x44   :  { %165 = vperm.xlu2 %860, %v976_v12   ;;  %161 = vperm.xlu1 %859, %v948_v7  }
  0x45   :  { %169 = vperm.xlu0 %861, %v971_v11  }
  0x4c   :  { %177 = vperm.xlu2 %860, %v994_v15   ;;  %173 = vperm.xlu1 %859, %v966_v10  }
  0x4d   :  { %181 = vperm.xlu0 %861, %v989_v14  }
  0x54   :  { %189 = vperm.xlu2 %860, %v1002_v16   ;;  %185 = vperm.xlu1 %859, %v984_v13  }
  0x55   :  { %862 = vset.pattern.permute.xlu0 %v883_v18 }
  0x56   :  { %226 = vperm.xlu0 %862, %v922_v3  }
  0x5c   :  { %864 = vset.pattern.permute.xlu2 %v883_v18  ;;  %863 = vset.pattern.permute.xlu1 %v883_v18  ;;  %v54_v19 = vpop.permute.xlu2 %53 }
  0x5d   :  { %234 = vperm.xlu2 %864, %v917_v2   ;;  %230 = vperm.xlu1 %863, %v940_v6   ;;  %v116_v41 = vmul.f32 %v1053_v30, %v54_v19 }
  0x5e   :  { %246 = vperm.xlu0 %862, %v930_v4  }
  0x64   :  { %v1025_v20 = vpop.permute.xlu2 %58 }
  0x65   :  { %242 = vperm.xlu2 %864, %v912_v1   ;;  %238 = vperm.xlu1 %863, %v935_v5  }
  0x66   :  { %258 = vperm.xlu0 %862, %v948_v7  }
  0x6c   :  { %v1030_v21 = vpop.permute.xlu2 %73 }
  0x6d   :  { %254 = vperm.xlu2 %864, %v953_v8   ;;  %250 = vperm.xlu1 %863, %v958_v9  }
  0x6e   :  { %270 = vperm.xlu0 %862, %v966_v10  }
  0x74   :  { %v1035_v22 = vpop.permute.xlu2 %88 }
  0x75   :  { %v1037_v23 = vpop.permute.xlu1 %43  ;;  %266 = vperm.xlu2 %864, %v971_v11   ;;  %262 = vperm.xlu1 %863, %v976_v12   ;;  %v34_v24 = vpop.permute.xlu0 %33 }
  0x76   :  { %282 = vperm.xlu0 %862, %v984_v13   ;;  %v112_v50 = vmul.f32 %v1053_v30, %v34_v24  ;;  %v114_v19 = vmul.f32 %v1053_v30, %v1037_v23  ;;  %v117_v23 = vmul.f32 %v1053_v30, %v1025_v20 }
  0x7c   :  { %v1042_v25 = vpop.permute.xlu2 %103 }
  0x7d   :  { %v49_v26 = vpop.permute.xlu1 %48  ;;  %278 = vperm.xlu2 %864, %v989_v14   ;;  %274 = vperm.xlu1 %863, %v994_v15   ;;  %v39_v27 = vpop.permute.xlu0 %38 }
  0x7e   :  { %866 = vset.pattern.permute.xlu0 %v884_v28  ;;  %v113_v31 = vmul.f32 %v1053_v30, %v39_v27  ;;  %v115_v62 = vmul.f32 %v1053_v30, %v49_v26 }
  0x7f   :  { %327 = vperm.xlu0 %866, %v940_v6  }
  0x85   :  { %v1056_v32 = vpop.permute.xlu1 %68  ;;  %865 = vset.pattern.permute.xlu2 %v884_v28  ;;  %286 = vperm.xlu1 %863, %v1002_v16   ;;  %v64_v34 = vpop.permute.xlu0 %63 }
  0x86   :  { %v134_v35 = vpop.permute.xlu2 %133  ;;  %323 = vperm.xlu2 %865, %v922_v3   ;;  %v118_v44 = vmul.f32 %v1053_v30, %v64_v34 }
  0x87   :  { %v194_v36 = vmul.f32 %v1060_v33, %v134_v35  ;;  %347 = vperm.xlu0 %866, %v958_v9  }
  0x89   :  { %v1065_v37 = vadd.f32 %v194_v36, %v113_v31 }
  0x8d   :  { %v1067_v38 = vpop.permute.xlu1 %83  ;;  %867 = vset.pattern.permute.xlu1 %v884_v28  ;;  %v79_v39 = vpop.permute.xlu0 %78 }
  0x8e   :  { %v146_v40 = vpop.permute.xlu2 %145  ;;  %335 = vperm.xlu2 %865, %v935_v5   ;;  %331 = vperm.xlu1 %867, %v917_v2   ;;  %v121_v51 = vmul.f32 %v1053_v30, %v79_v39 }
  0x8f   :  { %v197_v42 = vmul.f32 %v1060_v33, %v146_v40  ;;  %359 = vperm.xlu0 %866, %v976_v12  }
  0x91   :  { %v1074_v43 = vadd.f32 %v197_v42, %v116_v41  ;;  %v119_v41 = vmul.f32 %v1053_v30, %v1056_v32 }
  0x95   :  { %v1077_v45 = vpop.permute.xlu1 %98  ;;  %v94_v46 = vpop.permute.xlu0 %93 }
  0x96   :  { %v154_v47 = vpop.permute.xlu2 %153  ;;  %343 = vperm.xlu2 %865, %v930_v4   ;;  %339 = vperm.xlu1 %867, %v912_v1   ;;  %v124_v59 = vmul.f32 %v1053_v30, %v94_v46 }
  0x97   :  { %v199_v48 = vmul.f32 %v1060_v33, %v154_v47  ;;  %371 = vperm.xlu0 %866, %v994_v15  }
  0x99   :  { %v1083_v49 = vadd.f32 %v199_v48, %v118_v44  ;;  %v1124_v48 = vperm.slane %v1050_v29, 2 }
  0x9d   :  { %v109_v52 = vpop.permute.xlu0 %108 }
  0x9e   :  { %v166_v53 = vpop.permute.xlu2 %165  ;;  %355 = vperm.xlu2 %865, %v948_v7   ;;  %351 = vperm.xlu1 %867, %v953_v8   ;;  %v130_v54 = vpop.permute.xlu1 %129  ;;  %v127_v26 = vmul.f32 %v1053_v30, %v109_v52 }
  0x9f   :  { %v202_v55 = vmul.f32 %v1060_v33, %v166_v53  ;;  %v193_v56 = vmul.f32 %v1060_v33, %v130_v54  ;;  %383 = vperm.xlu0 %866, %v1002_v16   ;;  %v122_v53 = vmul.f32 %v1053_v30, %v1067_v38  ;;  %v125_v38 = vmul.f32 %v1053_v30, %v1077_v45 }
  0xa1   :  { %v1092_v57 = vadd.f32 %v202_v55, %v121_v51  ;;  %v1094_v58 = vadd.f32 %v193_v56, %v112_v50  ;;  %v120_v50 = vmul.f32 %v1053_v30, %v1030_v21 }
  0xa6   :  { %v178_v60 = vpop.permute.xlu2 %177  ;;  %367 = vperm.xlu2 %865, %v966_v10   ;;  %363 = vperm.xlu1 %867, %v971_v11   ;;  %v142_v61 = vpop.permute.xlu1 %141 }
  0xa7   :  { %v205_v63 = vmul.f32 %v1060_v33, %v178_v60  ;;  %v196_v0 = vmul.f32 %v1060_v33, %v142_v61  ;;  %870 = vset.pattern.permute.xlu0 %v885_v17  ;;  %v138_v18 = vpop.permute.xlu0 %137  ;;  %v123_v61 = vmul.f32 %v1053_v30, %v1035_v22 }
  0xa8   :  { %v195_v24 = vmul.f32 %v1060_v33, %v138_v18  ;;  %428 = vperm.xlu0 %870, %v917_v2  }
  0xa9   :  { %v1106_v27 = vadd.f32 %v205_v63, %v124_v59  ;;  %v1108_v28 = vadd.f32 %v196_v0, %v115_v62 }
  0xaa   :  { %v211_v31 = vadd.f32 %v195_v24, %v114_v19 }
  0xae   :  { %v190_v34 = vpop.permute.xlu2 %189  ;;  %379 = vperm.xlu2 %865, %v984_v13   ;;  %375 = vperm.xlu1 %867, %v989_v14   ;;  %v150_v35 = vpop.permute.xlu1 %149 }
  0xaf   :  { %v208_v36 = vmul.f32 %v1060_v33, %v190_v34  ;;  %v198_v39 = vmul.f32 %v1060_v33, %v150_v35  ;;  %v158_v40 = vpop.permute.xlu0 %157 }
  0xb0   :  { %v200_v42 = vmul.f32 %v1060_v33, %v158_v40  ;;  %448 = vperm.xlu0 %870, %v953_v8  }
  0xb1   :  { %v1121_v44 = vadd.f32 %v208_v36, %v127_v26  ;;  %v214_v46 = vadd.f32 %v198_v39, %v117_v23  ;;  %v126_v26 = vmul.f32 %v1053_v30, %v1042_v25  ;;  %v886_v23 = vmov 5  }
  0xb2   :  { %v216_v47 = vadd.f32 %v200_v42, %v119_v41 }
  0xb6   :  { %869 = vset.pattern.permute.xlu2 %v885_v17  ;;  %868 = vset.pattern.permute.xlu1 %v885_v17  ;;  %v162_v20 = vpop.permute.xlu1 %161 }
  0xb7   :  { %v201_v51 = vmul.f32 %v1060_v33, %v162_v20  ;;  %v170_v32 = vpop.permute.xlu0 %169  ;;  %v235_v52 = vpop.permute.xlu2 %234  ;;  %424 = vperm.xlu2 %869, %v940_v6   ;;  %420 = vperm.xlu1 %868, %v922_v3  }
  0xb8   :  { %v203_v54 = vmul.f32 %v1060_v33, %v170_v32  ;;  %v292_v55 = vmul.f32 %v1124_v48, %v235_v52  ;;  %460 = vperm.xlu0 %870, %v971_v11  }
  0xb9   :  { %v217_v56 = vadd.f32 %v201_v51, %v120_v50 }
  0xba   :  { %v219_v59 = vadd.f32 %v203_v54, %v122_v53  ;;  %v1136_v21 = vadd.f32 %v292_v55, %v211_v31 }
  0xbe   :  { %v174_v60 = vpop.permute.xlu1 %173 }
  0xbf   :  { %v204_v62 = vmul.f32 %v1060_v33, %v174_v60  ;;  %v182_v63 = vpop.permute.xlu0 %181  ;;  %v243_v0 = vpop.permute.xlu2 %242  ;;  %436 = vperm.xlu2 %869, %v912_v1   ;;  %432 = vperm.xlu1 %868, %v935_v5  }
  0xc0   :  { %v206_v17 = vmul.f32 %v1060_v33, %v182_v63  ;;  %v294_v18 = vmul.f32 %v1124_v48, %v243_v0  ;;  %472 = vperm.xlu0 %870, %v989_v14  }
  0xc1   :  { %v220_v19 = vadd.f32 %v204_v62, %v123_v61  ;;  %v1181_v61 = vperm.slane %v1050_v29, 3 }
  0xc2   :  { %v222_v24 = vadd.f32 %v206_v17, %v125_v38  ;;  %v1149_v22 = vadd.f32 %v294_v18, %v1074_v43 }
  0xc6   :  { %v186_v31 = vpop.permute.xlu1 %185 }
  0xc7   :  { %v207_v34 = vmul.f32 %v1060_v33, %v186_v31  ;;  %v255_v35 = vpop.permute.xlu2 %254  ;;  %444 = vperm.xlu2 %869, %v958_v9   ;;  %440 = vperm.xlu1 %868, %v930_v4  }
  0xc8   :  { %v297_v45 = vmul.f32 %v1124_v48, %v255_v35  ;;  %871 = vset.pattern.permute.xlu0 %v886_v23  ;;  %v227_v36 = vpop.permute.xlu0 %226 }
  0xc9   :  { %v223_v39 = vadd.f32 %v207_v34, %v126_v26  ;;  %v290_v43 = vmul.f32 %v1124_v48, %v227_v36  ;;  %517 = vperm.xlu0 %871, %v922_v3  }
  0xca   :  { %v1159_v40 = vadd.f32 %v297_v45, %v216_v47 }
  0xcb   :  { %v306_v25 = vadd.f32 %v290_v43, %v1094_v58 }
  0xcf   :  { %v267_v30 = vpop.permute.xlu2 %266  ;;  %456 = vperm.xlu2 %869, %v976_v12   ;;  %452 = vperm.xlu1 %868, %v948_v7   ;;  %v231_v33 = vpop.permute.xlu1 %230 }
  0xd0   :  { %v300_v41 = vmul.f32 %v1124_v48, %v267_v30  ;;  %v291_v42 = vmul.f32 %v1124_v48, %v231_v33  ;;  %v247_v20 = vpop.permute.xlu0 %246 }
  0xd1   :  { %v295_v50 = vmul.f32 %v1124_v48, %v247_v20  ;;  %537 = vperm.xlu0 %871, %v930_v4  }
  0xd2   :  { %v1168_v51 = vadd.f32 %v300_v41, %v219_v59  ;;  %v307_v47 = vadd.f32 %v291_v42, %v1065_v37  ;;  %v887_v41 = vmov 6  }
  0xd3   :  { %v311_v58 = vadd.f32 %v295_v50, %v214_v46 }
  0xd7   :  { %v279_v32 = vpop.permute.xlu2 %278  ;;  %468 = vperm.xlu2 %869, %v994_v15   ;;  %464 = vperm.xlu1 %868, %v966_v10   ;;  %v239_v52 = vpop.permute.xlu1 %238 }
  0xd8   :  { %v303_v53 = vmul.f32 %v1124_v48, %v279_v32  ;;  %v293_v54 = vmul.f32 %v1124_v48, %v239_v52  ;;  %v259_v55 = vpop.permute.xlu0 %258 }
  0xd9   :  { %v298_v60 = vmul.f32 %v1124_v48, %v259_v55  ;;  %549 = vperm.xlu0 %871, %v948_v7  }
  0xda   :  { %v1177_v59 = vadd.f32 %v303_v53, %v222_v24  ;;  %v309_v37 = vadd.f32 %v293_v54, %v1108_v28 }
  0xdb   :  { %v314_v46 = vadd.f32 %v298_v60, %v217_v56 }
  0xdf   :  { %480 = vperm.xlu2 %869, %v1002_v16   ;;  %476 = vperm.xlu1 %868, %v984_v13   ;;  %v251_v62 = vpop.permute.xlu1 %250 }
  0xe0   :  { %v296_v63 = vmul.f32 %v1124_v48, %v251_v62  ;;  %v271_v0 = vpop.permute.xlu0 %270  ;;  %v324_v38 = vpop.permute.xlu2 %323 }
  0xe1   :  { %v301_v17 = vmul.f32 %v1124_v48, %v271_v0  ;;  %v387_v18 = vmul.f32 %v1181_v61, %v324_v38  ;;  %561 = vperm.xlu0 %871, %v966_v10  }
  0xe2   :  { %v312_v28 = vadd.f32 %v296_v63, %v1083_v49 }
  0xe3   :  { %v317_v56 = vadd.f32 %v301_v17, %v220_v19  ;;  %v1190_v24 = vadd.f32 %v387_v18, %v306_v25 }
  0xe7   :  { %873 = vset.pattern.permute.xlu2 %v886_v23  ;;  %872 = vset.pattern.permute.xlu1 %v886_v23  ;;  %v263_v31 = vpop.permute.xlu1 %262 }
  0xe8   :  { %v299_v26 = vmul.f32 %v1124_v48, %v263_v31  ;;  %v283_v34 = vpop.permute.xlu0 %282  ;;  %525 = vperm.xlu2 %873, %v917_v2   ;;  %v336_v35 = vpop.permute.xlu2 %335  ;;  %521 = vperm.xlu1 %872, %v940_v6  }
  0xe9   :  { %v304_v45 = vmul.f32 %v1124_v48, %v283_v34  ;;  %v390_v36 = vmul.f32 %v1181_v61, %v336_v35  ;;  %573 = vperm.xlu0 %871, %v984_v13  }
  0xea   :  { %v315_v49 = vadd.f32 %v299_v26, %v1092_v57 }
  0xeb   :  { %v320_v19 = vadd.f32 %v304_v45, %v223_v39  ;;  %v1199_v43 = vadd.f32 %v390_v36, %v309_v37  ;;  %v1244_v36 = vperm.slane %v1050_v29, 4 }
  0xef   :  { %v275_v23 = vpop.permute.xlu1 %274 }
  0xf0   :  { %v302_v25 = vmul.f32 %v1124_v48, %v275_v23  ;;  %533 = vperm.xlu2 %873, %v912_v1   ;;  %v344_v30 = vpop.permute.xlu2 %343  ;;  %529 = vperm.xlu1 %872, %v935_v5  }
  0xf1   :  { %v392_v33 = vmul.f32 %v1181_v61, %v344_v30  ;;  %875 = vset.pattern.permute.xlu0 %v887_v41  ;;  %v328_v42 = vpop.permute.xlu0 %327 }
  0xf2   :  { %v318_v20 = vadd.f32 %v302_v25, %v1106_v27  ;;  %v388_v57 = vmul.f32 %v1181_v61, %v328_v42  ;;  %618 = vperm.xlu0 %875, %v940_v6  }
  0xf3   :  { %v1208_v39 = vadd.f32 %v392_v33, %v311_v58 }
  0xf4   :  { %v404_v50 = vadd.f32 %v388_v57, %v307_v47 }
  0xf7   :  { %v287_v32 = vpop.permute.xlu1 %286 }
  0xf8   :  { %v305_v52 = vmul.f32 %v1124_v48, %v287_v32  ;;  %545 = vperm.xlu2 %873, %v953_v8   ;;  %v356_v53 = vpop.permute.xlu2 %355  ;;  %541 = vperm.xlu1 %872, %v958_v9  }
  0xf9   :  { %v395_v54 = vmul.f32 %v1181_v61, %v356_v53  ;;  %v348_v55 = vpop.permute.xlu0 %347 }
  0xfa   :  { %v321_v27 = vadd.f32 %v305_v52, %v1121_v44  ;;  %v393_v60 = vmul.f32 %v1181_v61, %v348_v55  ;;  %638 = vperm.xlu0 %875, %v958_v9   ;;  %v888_v55 = vmov 7  }
  0xfb   :  { %v1217_v58 = vadd.f32 %v395_v54, %v314_v46 }
  0xfc   :  { %v1219_v47 = vadd.f32 %v393_v60, %v312_v28 }
 0x100   :  { %557 = vperm.xlu2 %873, %v971_v11   ;;  %v368_v48 = vpop.permute.xlu2 %367  ;;  %553 = vperm.xlu1 %872, %v976_v12   ;;  %v332_v37 = vpop.permute.xlu1 %331 }
 0x101   :  { %v398_v62 = vmul.f32 %v1181_v61, %v368_v48  ;;  %v389_v63 = vmul.f32 %v1181_v61, %v332_v37  ;;  %v360_v0 = vpop.permute.xlu0 %359 }
 0x102   :  { %v396_v44 = vmul.f32 %v1181_v61, %v360_v0  ;;  %650 = vperm.xlu0 %875, %v976_v12  }
 0x103   :  { %v1227_v38 = vadd.f32 %v398_v62, %v317_v56  ;;  %v405_v46 = vadd.f32 %v389_v63, %v1136_v21 }
 0x104   :  { %v1230_v17 = vadd.f32 %v396_v44, %v315_v49 }
 0x108   :  { %569 = vperm.xlu2 %873, %v989_v14   ;;  %v380_v18 = vpop.permute.xlu2 %379  ;;  %565 = vperm.xlu1 %872, %v994_v15   ;;  %v340_v28 = vpop.permute.xlu1 %339 }
 0x109   :  { %v401_v31 = vmul.f32 %v1181_v61, %v380_v18  ;;  %v391_v26 = vmul.f32 %v1181_v61, %v340_v28  ;;  %v372_v34 = vpop.permute.xlu0 %371 }
 0x10a   :  { %v399_v35 = vmul.f32 %v1181_v61, %v372_v34  ;;  %662 = vperm.xlu0 %875, %v994_v15  }
 0x10b   :  { %v1238_v56 = vadd.f32 %v401_v31, %v320_v19  ;;  %v407_v21 = vadd.f32 %v391_v26, %v1149_v22 }
 0x10c   :  { %v1241_v45 = vadd.f32 %v399_v35, %v318_v20 }
 0x110   :  { %874 = vset.pattern.permute.xlu2 %v887_v41  ;;  %577 = vperm.xlu1 %872, %v1002_v16   ;;  %v352_v49 = vpop.permute.xlu1 %351 }
 0x111   :  { %v394_v23 = vmul.f32 %v1181_v61, %v352_v49  ;;  %v384_v25 = vpop.permute.xlu0 %383  ;;  %614 = vperm.xlu2 %874, %v922_v3   ;;  %v425_v30 = vpop.permute.xlu2 %424 }
 0x112   :  { %v402_v19 = vmul.f32 %v1181_v61, %v384_v25  ;;  %v485_v33 = vmul.f32 %v1244_v36, %v425_v30  ;;  %674 = vperm.xlu0 %875, %v1002_v16  }
 0x113   :  { %v410_v22 = vadd.f32 %v394_v23, %v1159_v40 }
 0x114   :  { %v418_v42 = vadd.f32 %v402_v19, %v321_v27  ;;  %v1253_v20 = vadd.f32 %v485_v33, %v404_v50 }
 0x118   :  { %876 = vset.pattern.permute.xlu1 %v887_v41  ;;  %v364_v57 = vpop.permute.xlu1 %363 }
 0x119   :  { %v397_v32 = vmul.f32 %v1181_v61, %v364_v57  ;;  %626 = vperm.xlu2 %874, %v935_v5   ;;  %v437_v52 = vpop.permute.xlu2 %436  ;;  %622 = vperm.xlu1 %876, %v917_v2  }
 0x11a   :  { %v488_v53 = vmul.f32 %v1244_v36, %v437_v52  ;;  %v429_v54 = vpop.permute.xlu0 %428  ;;  %879 = vset.pattern.permute.xlu0 %v888_v55 }
 0x11b   :  { %v413_v60 = vadd.f32 %v397_v32, %v1168_v51  ;;  %v486_v40 = vmul.f32 %v1244_v36, %v429_v54  ;;  %719 = vperm.xlu0 %879, %v917_v2  }
 0x11c   :  { %v1262_v41 = vadd.f32 %v488_v53, %v407_v21 }
 0x11d   :  { %v502_v50 = vadd.f32 %v486_v40, %v405_v46 }
 0x120   :  { %v376_v27 = vpop.permute.xlu1 %375 }
 0x121   :  { %v400_v48 = vmul.f32 %v1181_v61, %v376_v27  ;;  %634 = vperm.xlu2 %874, %v930_v4   ;;  %v445_v37 = vpop.permute.xlu2 %444  ;;  %630 = vperm.xlu1 %876, %v912_v1  }
 0x122   :  { %v490_v62 = vmul.f32 %v1244_v36, %v445_v37  ;;  %v449_v63 = vpop.permute.xlu0 %448 }
 0x123   :  { %v416_v51 = vadd.f32 %v400_v48, %v1177_v59  ;;  %v491_v0 = vmul.f32 %v1244_v36, %v449_v63  ;;  %739 = vperm.xlu0 %879, %v953_v8  }
 0x124   :  { %v1272_v2 = vadd.f32 %v490_v62, %v1219_v47 }
 0x125   :  { %v1274_v44 = vadd.f32 %v491_v0, %v410_v22 }
 0x129   :  { %646 = vperm.xlu2 %874, %v948_v7   ;;  %v457_v61 = vpop.permute.xlu2 %456  ;;  %642 = vperm.xlu1 %876, %v953_v8   ;;  %v421_v46 = vpop.permute.xlu1 %420 }
 0x12a   :  { %v493_v18 = vmul.f32 %v1244_v36, %v457_v61  ;;  %v484_v28 = vmul.f32 %v1244_v36, %v421_v46  ;;  %v461_v59 = vpop.permute.xlu0 %460 }
 0x12b   :  { %v494_v31 = vmul.f32 %v1244_v36, %v461_v59  ;;  %751 = vperm.xlu0 %879, %v971_v11  }
 0x12c   :  { %v1283_v47 = vadd.f32 %v493_v18, %v1230_v17  ;;  %v500_v26 = vadd.f32 %v484_v28, %v1190_v24 }
 0x12d   :  { %v1286_v34 = vadd.f32 %v494_v31, %v413_v60 }
 0x131   :  { %658 = vperm.xlu2 %874, %v966_v10   ;;  %v469_v8 = vpop.permute.xlu2 %468  ;;  %654 = vperm.xlu1 %876, %v971_v11   ;;  %v433_v35 = vpop.permute.xlu1 %432  ;;  %v1303_v11 = vperm.slane %v1050_v29, 5 }
 0x132   :  { %v496_v21 = vmul.f32 %v1244_v36, %v469_v8  ;;  %v487_v49 = vmul.f32 %v1244_v36, %v433_v35  ;;  %v473_v23 = vpop.permute.xlu0 %472 }
 0x133   :  { %v497_v25 = vmul.f32 %v1244_v36, %v473_v23  ;;  %763 = vperm.xlu0 %879, %v989_v14  }
 0x134   :  { %v1295_v17 = vadd.f32 %v496_v21, %v1241_v45  ;;  %v1298_v24 = vadd.f32 %v487_v49, %v1199_v43 }
 0x135   :  { %v1300_v30 = vadd.f32 %v497_v25, %v416_v51 }
 0x139   :  { %670 = vperm.xlu2 %874, %v984_v13   ;;  %v481_v19 = vpop.permute.xlu2 %480  ;;  %666 = vperm.xlu1 %876, %v989_v14   ;;  %v441_v33 = vpop.permute.xlu1 %440 }
 0x13a   :  { %v499_v22 = vmul.f32 %v1244_v36, %v481_v19  ;;  %v489_v57 = vmul.f32 %v1244_v36, %v441_v33 }
 0x13b   :  { %v518_v45 = vpop.permute.xlu0 %517 }
 0x13c   :  { %v1309_v32 = vadd.f32 %v499_v22, %v418_v42  ;;  %v505_v43 = vadd.f32 %v489_v57, %v1208_v39  ;;  %v581_v52 = vmul.f32 %v1303_v11, %v518_v45 }
 0x13e   :  { %v597_v53 = vadd.f32 %v581_v52, %v500_v26 }
 0x141   :  { %878 = vset.pattern.permute.xlu2 %v888_v55  ;;  %877 = vset.pattern.permute.xlu1 %v888_v55  ;;  %v453_v54 = vpop.permute.xlu1 %452 }
 0x142   :  { %v492_v60 = vmul.f32 %v1244_v36, %v453_v54  ;;  %715 = vperm.xlu2 %878, %v940_v6   ;;  %v526_v14 = vpop.permute.xlu2 %525  ;;  %711 = vperm.xlu1 %877, %v922_v3  }
 0x143   :  { %v583_v40 = vmul.f32 %v1303_v11, %v526_v14  ;;  %v538_v27 = vpop.permute.xlu0 %537 }
 0x144   :  { %v508_v42 = vadd.f32 %v492_v60, %v1217_v58  ;;  %v586_v39 = vmul.f32 %v1303_v11, %v538_v27 }
 0x145   :  { %v1319_v48 = vadd.f32 %v583_v40, %v502_v50 }
 0x146   :  { %v602_v37 = vadd.f32 %v586_v39, %v505_v43 }
 0x149   :  { %v465_v62 = vpop.permute.xlu1 %464 }
 0x14a   :  { %v495_v55 = vmul.f32 %v1244_v36, %v465_v62  ;;  %727 = vperm.xlu2 %878, %v912_v1   ;;  %v534_v63 = vpop.permute.xlu2 %533  ;;  %723 = vperm.xlu1 %877, %v935_v5  }
 0x14b   :  { %v585_v3 = vmul.f32 %v1303_v11, %v534_v63  ;;  %v550_v6 = vpop.permute.xlu0 %549 }
 0x14c   :  { %v511_v51 = vadd.f32 %v495_v55, %v1227_v38  ;;  %v589_v58 = vmul.f32 %v1303_v11, %v550_v6 }
 0x14d   :  { %v1328_v0 = vadd.f32 %v585_v3, %v1262_v41 }
 0x14e   :  { %v605_v50 = vadd.f32 %v589_v58, %v508_v42  ;;  %v1386_v42 = vperm.slane %v1050_v29, 7 }
 0x151   :  { %v477_v61 = vpop.permute.xlu1 %476 }
 0x152   :  { %v498_v46 = vmul.f32 %v1244_v36, %v477_v61  ;;  %735 = vperm.xlu2 %878, %v958_v9   ;;  %v546_v1 = vpop.permute.xlu2 %545  ;;  %731 = vperm.xlu1 %877, %v930_v4  }
 0x153   :  { %v588_v5 = vmul.f32 %v1303_v11, %v546_v1  ;;  %v562_v18 = vpop.permute.xlu0 %561 }
 0x154   :  { %v514_v28 = vadd.f32 %v498_v46, %v1238_v56  ;;  %v592_v38 = vmul.f32 %v1303_v11, %v562_v18 }
 0x155   :  { %v1337_v59 = vadd.f32 %v588_v5, %v1274_v44 }
 0x156   :  { %v608_v41 = vadd.f32 %v592_v38, %v511_v51  ;;  %v1396_v51 = vld [vmem:[%s1535_s2] ss:$0 sm:$0xff] }
 0x15a   :  { %747 = vperm.xlu2 %878, %v976_v12   ;;  %v558_v31 = vpop.permute.xlu2 %557  ;;  %743 = vperm.xlu1 %877, %v948_v7   ;;  %v522_v9 = vpop.permute.xlu1 %521 }
 0x15b   :  { %v591_v36 = vmul.f32 %v1303_v11, %v558_v31  ;;  %v574_v4 = vpop.permute.xlu0 %573  ;;  %v582_v18 = vmul.f32 %v1303_v11, %v522_v9 }
 0x15c   :  { %v595_v26 = vmul.f32 %v1303_v11, %v574_v4 }
 0x15d   :  { %v1344_v8 = vadd.f32 %v591_v36, %v1286_v34  ;;  %v1355_v34 = vperm.slane %v1050_v29, 6  ;;  %v598_v38 = vadd.f32 %v582_v18, %v1253_v20 }
 0x15e   :  { %v611_v56 = vadd.f32 %v595_v26, %v514_v28 }
 0x162   :  { %759 = vperm.xlu2 %878, %v994_v15   ;;  %v570_v44 = vpop.permute.xlu2 %569  ;;  %755 = vperm.xlu1 %877, %v966_v10   ;;  %v530_v35 = vpop.permute.xlu1 %529 }
 0x163   :  { %v594_v12 = vmul.f32 %v1303_v11, %v570_v44  ;;  %v584_v7 = vmul.f32 %v1303_v11, %v530_v35 }
 0x164   :  { %v619_v21 = vpop.permute.xlu0 %618 }
 0x165   :  { %v1351_v49 = vadd.f32 %v594_v12, %v1300_v30  ;;  %v600_v23 = vadd.f32 %v584_v7, %v1298_v24  ;;  %v679_v28 = vmul.f32 %v1355_v34, %v619_v21 }
 0x167   :  { %v695_v26 = vadd.f32 %v679_v28, %v598_v38 }
 0x16a   :  { %771 = vperm.xlu2 %878, %v1002_v16   ;;  %767 = vperm.xlu1 %877, %v984_v13   ;;  %v542_v15 = vpop.permute.xlu1 %541 }
 0x16b   :  { %v615_v10 = vpop.permute.xlu2 %614 }
 0x16c   :  { %v678_v25 = vmul.f32 %v1355_v34, %v615_v10  ;;  %v1360_v19 = vpop.permute.xlu0 %638 }
 0x16e   :  { %v1362_v33 = vadd.f32 %v678_v25, %v597_v53 }
 0x172   :  { %v1364_v22 = vpop.permute.xlu1 %553 }
 0x173   :  { %v627_v30 = vpop.permute.xlu2 %626 }
 0x174   :  { %v681_v24 = vmul.f32 %v1355_v34, %v627_v30  ;;  %v1367_v57 = vpop.permute.xlu0 %650  ;;  %v587_v30 = vmul.f32 %v1303_v11, %v542_v15 }
 0x176   :  { %v1369_v45 = vadd.f32 %v681_v24, %v600_v23 }
 0x17a   :  { %v1371_v16 = vpop.permute.xlu1 %565 }
 0x17b   :  { %v635_v13 = vpop.permute.xlu2 %634 }
 0x17c   :  { %v683_v43 = vmul.f32 %v1355_v34, %v635_v13  ;;  %v1374_v52 = vpop.permute.xlu0 %662 }
 0x17e   :  { %v1376_v54 = vadd.f32 %v683_v43, %v602_v37 }
 0x182   :  { %v1378_v53 = vpop.permute.xlu1 %577 }
 0x183   :  { %v647_v60 = vpop.permute.xlu2 %646 }
 0x184   :  { %v686_v14 = vmul.f32 %v1355_v34, %v647_v60  ;;  %v1381_v40 = vpop.permute.xlu0 %674 }
 0x186   :  { %v1383_v27 = vadd.f32 %v686_v14, %v605_v50 }
 0x18b   :  { %v659_v39 = vpop.permute.xlu2 %658  ;;  %v623_v62 = vpop.permute.xlu1 %622 }
 0x18c   :  { %v689_v55 = vmul.f32 %v1355_v34, %v659_v39  ;;  %v680_v63 = vmul.f32 %v1355_v34, %v623_v62  ;;  %v603_v39 = vadd.f32 %v587_v30, %v1272_v2  ;;  %v684_v62 = vmul.f32 %v1355_v34, %v1360_v19 }
 0x18d   :  { %v720_v37 = vpop.permute.xlu0 %719 }
 0x18e   :  { %v1390_v3 = vadd.f32 %v689_v55, %v608_v41  ;;  %v696_v6 = vadd.f32 %v680_v63, %v1319_v48  ;;  %v777_v58 = vmul.f32 %v1386_v42, %v720_v37  ;;  %v700_v19 = vadd.f32 %v684_v62, %v603_v39 }
 0x190   :  { %v793_v29 = vadd.f32 %v777_v58, %v696_v6  ;;  %v590_v6 = vmul.f32 %v1303_v11, %v1364_v22 }
 0x192   :  { %v813_v50 = vadd.f32 %v1396_v51, %v793_v29 }
 0x193   :  { %v671_v61 = vpop.permute.xlu2 %670  ;;  %v631_v46 = vpop.permute.xlu1 %630 }
 0x194   :  { %830 = vst.msk [vmem:[%s1536_s3 + $0x10] sm:$0xff] %vm827_vm0, %v813_v50  ;;  %v692_v48 = vmul.f32 %v1355_v34, %v671_v61  ;;  %v682_v9 = vmul.f32 %v1355_v34, %v631_v46  ;;  %v606_v46 = vadd.f32 %v590_v6, %v1283_v47 }
 0x195   :  { %v740_v1 = vpop.permute.xlu0 %739 }
 0x196   :  { %v1405_v5 = vadd.f32 %v692_v48, %v611_v56  ;;  %v782_v4 = vmul.f32 %v1386_v42, %v740_v1  ;;  %v698_v24 = vadd.f32 %v682_v9, %v1328_v0  ;;  %v687_v48 = vmul.f32 %v1355_v34, %v1367_v57 }
 0x197   :  { %v593_v57 = vmul.f32 %v1303_v11, %v1371_v16 }
 0x198   :  { %v703_v47 = vadd.f32 %v687_v48, %v606_v46 }
 0x19b   :  { %v643_v41 = vpop.permute.xlu1 %642 }
 0x19c   :  { %v685_v31 = vmul.f32 %v1355_v34, %v643_v41  ;;  %v716_v36 = vpop.permute.xlu2 %715 }
 0x19d   :  { %v776_v44 = vmul.f32 %v1386_v42, %v716_v36  ;;  %v752_v56 = vpop.permute.xlu0 %751  ;;  %v609_v36 = vadd.f32 %v593_v57, %v1295_v17 }
 0x19e   :  { %v701_v35 = vadd.f32 %v685_v31, %v1337_v59  ;;  %v785_v25 = vmul.f32 %v1386_v42, %v752_v56 }
 0x19f   :  { %v792_v12 = vadd.f32 %v776_v44, %v695_v26 }
 0x1a0   :  { %v798_v7 = vadd.f32 %v782_v4, %v701_v35  ;;  %v690_v4 = vmul.f32 %v1355_v34, %v1374_v52  ;;  %v596_v52 = vmul.f32 %v1303_v11, %v1378_v53 }
 0x1a1   :  { %v812_v21 = vadd.f32 %v1396_v51, %v792_v12 }
 0x1a2   :  { %v818_v20 = vadd.f32 %v1396_v51, %v798_v7  ;;  %v706_v17 = vadd.f32 %v690_v4, %v609_v36  ;;  %v612_v9 = vadd.f32 %v596_v52, %v1309_v32 }
 0x1a3   :  { %829 = vst.msk [vmem:[%s1536_s3 + $0x8] sm:$0xff] %vm827_vm0, %v812_v21  ;;  %v655_v23 = vpop.permute.xlu1 %654  ;;  %v693_v21 = vmul.f32 %v1355_v34, %v1381_v40 }
 0x1a4   :  { %835 = vst.msk [vmem:[%s1536_s3 + $0x38] sm:$0xff] %vm827_vm0, %v818_v20  ;;  %v688_v59 = vmul.f32 %v1355_v34, %v655_v23  ;;  %v728_v10 = vpop.permute.xlu2 %727 }
 0x1a5   :  { %v779_v13 = vmul.f32 %v1386_v42, %v728_v10  ;;  %v764_v63 = vpop.permute.xlu0 %763  ;;  %v709_v32 = vadd.f32 %v693_v21, %v612_v9 }
 0x1a6   :  { %v704_v43 = vadd.f32 %v688_v59, %v1344_v8  ;;  %v788_v15 = vmul.f32 %v1386_v42, %v764_v63 }
 0x1a7   :  { %v795_v60 = vadd.f32 %v779_v13, %v698_v24 }
 0x1a8   :  { %v801_v14 = vadd.f32 %v785_v25, %v704_v43 }
 0x1a9   :  { %v815_v55 = vadd.f32 %v1396_v51, %v795_v60 }
 0x1aa   :  { %v821_v37 = vadd.f32 %v1396_v51, %v801_v14 }
 0x1ab   :  { %832 = vst.msk [vmem:[%s1536_s3 + $0x20] sm:$0xff] %vm827_vm0, %v815_v55  ;;  %v667_v0 = vpop.permute.xlu1 %666 }
 0x1ac   :  { %838 = vst.msk [vmem:[%s1536_s3 + $0x50] sm:$0xff] %vm827_vm0, %v821_v37  ;;  %v691_v2 = vmul.f32 %v1355_v34, %v667_v0  ;;  %v736_v8 = vpop.permute.xlu2 %735 }
 0x1ad   :  { %v781_v58 = vmul.f32 %v1386_v42, %v736_v8 }
 0x1ae   :  { %v707_v29 = vadd.f32 %v691_v2, %v1351_v49 }
 0x1af   :  { %v797_v50 = vadd.f32 %v781_v58, %v700_v19 }
 0x1b0   :  { %v804_v61 = vadd.f32 %v788_v15, %v707_v29 }
 0x1b1   :  { %v817_v1 = vadd.f32 %v1396_v51, %v797_v50 }
 0x1b2   :  { %v824_v18 = vadd.f32 %v1396_v51, %v804_v61 }
 0x1b3   :  { %834 = vst.msk [vmem:[%s1536_s3 + $0x30] sm:$0xff] %vm827_vm0, %v817_v1 }
 0x1b4   :  { %841 = vst.msk [vmem:[%s1536_s3 + $0x68] sm:$0xff] %vm827_vm0, %v824_v18  ;;  %v748_v49 = vpop.permute.xlu2 %747  ;;  %v712_v22 = vpop.permute.xlu1 %711 }
 0x1b5   :  { %v784_v28 = vmul.f32 %v1386_v42, %v748_v49  ;;  %v775_v38 = vmul.f32 %v1386_v42, %v712_v22 }
 0x1b7   :  { %v800_v41 = vadd.f32 %v784_v28, %v703_v47  ;;  %v791_v31 = vadd.f32 %v775_v38, %v1362_v33 }
 0x1b9   :  { %v820_v26 = vadd.f32 %v1396_v51, %v800_v41  ;;  %v811_v44 = vadd.f32 %v1396_v51, %v791_v31 }
 0x1bb   :  { %837 = vst.msk [vmem:[%s1536_s3 + $0x48] sm:$0xff] %vm827_vm0, %v820_v26 }
 0x1bc   :  { %828 = vst.msk [vmem:[%s1536_s3] sm:$0xff] %vm827_vm0, %v811_v44  ;;  %v760_v33 = vpop.permute.xlu2 %759  ;;  %v724_v16 = vpop.permute.xlu1 %723 }
 0x1bd   :  { %v787_v35 = vmul.f32 %v1386_v42, %v760_v33  ;;  %v778_v12 = vmul.f32 %v1386_v42, %v724_v16 }
 0x1bf   :  { %v803_v56 = vadd.f32 %v787_v35, %v706_v17  ;;  %v794_v7 = vadd.f32 %v778_v12, %v1369_v45 }
 0x1c1   :  { %v823_v20 = vadd.f32 %v1396_v51, %v803_v56  ;;  %v814_v23 = vadd.f32 %v1396_v51, %v794_v7 }
 0x1c3   :  { %840 = vst.msk [vmem:[%s1536_s3 + $0x60] sm:$0xff] %vm827_vm0, %v823_v20 }
 0x1c4   :  { %831 = vst.msk [vmem:[%s1536_s3 + $0x18] sm:$0xff] %vm827_vm0, %v814_v23  ;;  %v772_v11 = vpop.permute.xlu2 %771  ;;  %v732_v45 = vpop.permute.xlu1 %731 }
 0x1c5   :  { %v790_v53 = vmul.f32 %v1386_v42, %v772_v11  ;;  %v780_v34 = vmul.f32 %v1386_v42, %v732_v45 }
 0x1c7   :  { %v806_v40 = vadd.f32 %v790_v53, %v709_v32  ;;  %v796_v59 = vadd.f32 %v780_v34, %v1376_v54 }
 0x1c9   :  { %v826_v10 = vadd.f32 %v1396_v51, %v806_v40  ;;  %v816_v25 = vadd.f32 %v1396_v51, %v796_v59 }
 0x1cb   :  { %843 = vst.msk [vmem:[%s1536_s3 + $0x78] sm:$0xff] %vm827_vm0, %v826_v10 }
 0x1cc   :  { %833 = vst.msk [vmem:[%s1536_s3 + $0x28] sm:$0xff] %vm827_vm0, %v816_v25  ;;  %v744_v30 = vpop.permute.xlu1 %743 }
 0x1cd   :  { %v783_v24 = vmul.f32 %v1386_v42, %v744_v30 }
 0x1cf   :  { %v799_v13 = vadd.f32 %v783_v24, %v1383_v27 }
 0x1d1   :  { %v819_v54 = vadd.f32 %v1396_v51, %v799_v13 }
 0x1d3   :  { %836 = vst.msk [vmem:[%s1536_s3 + $0x40] sm:$0xff] %vm827_vm0, %v819_v54 }
 0x1d4   :  { %v756_v43 = vpop.permute.xlu1 %755 }
 0x1d5   :  { %v786_v60 = vmul.f32 %v1386_v42, %v756_v43 }
 0x1d7   :  { %v802_v14 = vadd.f32 %v786_v60, %v1390_v3 }
 0x1d9   :  { %v822_v39 = vadd.f32 %v1396_v51, %v802_v14 }
 0x1db   :  { %839 = vst.msk [vmem:[%s1536_s3 + $0x58] sm:$0xff] %vm827_vm0, %v822_v39 }
 0x1dc   :  { %v768_v27 = vpop.permute.xlu1 %767 }
 0x1dd   :  { %v789_v62 = vmul.f32 %v1386_v42, %v768_v27 }
 0x1df   :  { %v805_v55 = vadd.f32 %v789_v62, %v1405_v5 }
 0x1e1   :  { %v825_v63 = vadd.f32 %v1396_v51, %v805_v55 }
 0x1e3   :  { %842 = vst.msk [vmem:[%s1536_s3 + $0x70] sm:$0xff] %vm827_vm0, %v825_v63 }

</bundles_post_ra>
